<compile_context>
chip_gen: v5e
topology: v5e:2x2
jax: 0.10.0
libtpu: 0.0.40
codegen_flags: <defaults>
</compile_context>

<pallas_src>
import jax
import jax.numpy as jnp
import numpy as np
from jax import lax
from jax.experimental import pallas as pl
from jax.experimental.pallas import tpu as pltpu

BN_EPS = 1e-5
VMEM_LIMIT = 32 * 1024 * 1024  # explicit scoped-VMEM budget (safe on v5e/v6e/v7x)


def _round_up(x, m):
    return ((x + m - 1) // m) * m


def _pick_tile_m(m):
    # Bigger tiles track the HBM roofline better (~63% @256 -> ~85% @512+)
    # and amortize the ~0.35us per-grid-step overhead.  Tiny problems take the
    # whole (8-rounded) extent so we never over-pad.
    if m >= 4096:
        return 512
    if m >= 1024:
        return 256
    return _round_up(m, 8)


# ----------------------------------------------------------------------------
# Phase 1: conv-as-matmul (bf16 MXU, f32 accumulate) + per-channel sum / ssq
# ----------------------------------------------------------------------------
def _conv_stats_kernel(p_ref, w_ref, y_ref, sum_ref, ssq_ref):
    @pl.when(pl.program_id(1) == 0)
    def _init():
        sum_ref[...] = jnp.zeros_like(sum_ref)
        ssq_ref[...] = jnp.zeros_like(ssq_ref)

    # bf16 x bf16 -> f32 accumulate on the MXU.
    y = jnp.dot(p_ref[...], w_ref[...], preferred_element_type=jnp.float32)

    # Stats from the f32 accumulator BEFORE the bf16 downcast.  Sublane sums
    # go to the XLU and y*y to the VPU — free filler in this HBM-bound regime.
    sum_ref[...] += jnp.sum(y, axis=0, keepdims=True)      # broadcast to 8 rows
    ssq_ref[...] += jnp.sum(y * y, axis=0, keepdims=True)

    # Raw conv output emitted as bf16 (halves intermediate HBM traffic).
    y_ref[...] = y.astype(y_ref.dtype)


def _conv_stats_pallas(patches, w2d, tile_m, groups, tpg):
    mp, kdim = patches.shape
    cout = w2d.shape[1]
    return pl.pallas_call(
        _conv_stats_kernel,
        out_shape=(
            jax.ShapeDtypeStruct((mp, cout), jnp.bfloat16),         # raw conv out
            jax.ShapeDtypeStruct((groups * 8, cout), jnp.float32),  # per-group sum
            jax.ShapeDtypeStruct((groups * 8, cout), jnp.float32),  # per-group ssq
        ),
        grid=(groups, tpg),
        in_specs=[
            pl.BlockSpec((tile_m, kdim), lambda c, i: (c * tpg + i, 0)),
            pl.BlockSpec((kdim, cout), lambda c, i: (0, 0)),        # weights resident
        ],
        out_specs=(
            pl.BlockSpec((tile_m, cout), lambda c, i: (c * tpg + i, 0)),
            pl.BlockSpec((8, cout), lambda c, i: (c, 0)),           # per-group accum
            pl.BlockSpec((8, cout), lambda c, i: (c, 0)),           # per-group accum
        ),
        compiler_params=pltpu.CompilerParams(
            # Leading axis "parallel": shards phase 1 across v7x's two
            # TensorCores (per-group partial stats).  Reduction axis last,
            # "arbitrary", since the stats blocks are revisited across it.
            dimension_semantics=("parallel", "arbitrary"),
            vmem_limit_bytes=VMEM_LIMIT,
        ),
    )(patches, w2d)


# ----------------------------------------------------------------------------
# Phase 2 (final block only): folded BatchNorm + ReLU epilogue
# ----------------------------------------------------------------------------
def _bn_relu_kernel(y_ref, scale_ref, shift_ref, o_ref):
    y = y_ref[...].astype(jnp.float32)
    o_ref[...] = jnp.maximum(y * scale_ref[...] + shift_ref[...], 0.0)


def _bn_relu_pallas(y, scale, shift, tile_m):
    mp, cout = y.shape
    return pl.pallas_call(
        _bn_relu_kernel,
        out_shape=jax.ShapeDtypeStruct((mp, cout), jnp.float32),
        grid=(mp // tile_m,),
        in_specs=[
            pl.BlockSpec((tile_m, cout), lambda i: (i, 0)),
            pl.BlockSpec((1, cout), lambda i: (0, 0)),
            pl.BlockSpec((1, cout), lambda i: (0, 0)),
        ],
        out_specs=pl.BlockSpec((tile_m, cout), lambda i: (i, 0)),
        compiler_params=pltpu.CompilerParams(
            dimension_semantics=("parallel",),
            vmem_limit_bytes=VMEM_LIMIT,
        ),
    )(y, scale, shift)


# ----------------------------------------------------------------------------
# Layout glue (plain JAX): bf16 im2col, no extra full-size padding copies
# ----------------------------------------------------------------------------
def _im2col_bf16(x_nhwc, stride):
    n, h, w, cin = x_nhwc.shape
    xp = jnp.pad(x_nhwc, ((0, 0), (1, 1), (1, 1), (0, 0)))
    ho = (h + 2 - 3) // stride + 1
    wo = (w + 2 - 3) // stride + 1
    cols = [xp[:, kh:kh + stride * ho:stride, kw:kw + stride * wo:stride, :]
            for kh in range(3) for kw in range(3)]
    patches = jnp.stack(cols, axis=3)                 # (N, Ho, Wo, 9, Cin) bf16
    return patches.reshape(n * ho * wo, 9 * cin), ho, wo


def _conv_block(x_nhwc, w_oihw, gamma, beta, stride):
    """3x3 conv (pad=1) + training-mode BN folded to (scale, shift).

    The conv bias is intentionally dropped — it is exactly cancelled by the
    batch-statistics mean subtraction.

    Returns:
      y_pad        : (mp, cout) bf16 raw conv output (zero rows beyond m)
      scale, shift : (1, cout) f32 folded BN parameters
      meta         : (m, tile_m, n, ho, wo, cout)
    """
    n = x_nhwc.shape[0]
    cout = w_oihw.shape[0]

    patches, ho, wo = _im2col_bf16(x_nhwc, stride)
    m, kdim = patches.shape

    tile_m = _pick_tile_m(m)
    tiles = -(-m // tile_m)
    groups = 2 if tiles >= 2 else 1                   # v7x megacore split
    tpg = -(-tiles // groups)
    mp = groups * tpg * tile_m
    if mp > m:
        patches = jnp.pad(patches, ((0, mp - m), (0, 0)))

    w2d = jnp.transpose(w_oihw, (2, 3, 1, 0)).reshape(kdim, cout)
    w2d = w2d.astype(jnp.bfloat16)

    y_pad, ysum, yssq = _conv_stats_pallas(patches, w2d, tile_m, groups, tpg)

    # Tiny per-channel math in plain JAX; divide by the REAL row count
    # (padded rows contribute exact zeros to both accumulators).
    tot = ysum.reshape(groups, 8, cout)[:, 0, :].sum(axis=0)
    tot_sq = yssq.reshape(groups, 8, cout)[:, 0, :].sum(axis=0)
    m_f = jnp.float32(m)
    mean = tot / m_f
    var = jnp.maximum(tot_sq / m_f - mean * mean, 0.0)   # biased, single-pass
    inv_std = lax.rsqrt(var + BN_EPS)
    g = gamma.astype(jnp.float32)
    scale = (g * inv_std).reshape(1, cout)
    shift = (beta.astype(jnp.float32) - mean * g * inv_std).reshape(1, cout)
    return y_pad, scale, shift, (m, tile_m, n, ho, wo, cout)


@jax.jit
def down_forward(x_nchw, params):
    """`Down.forward` — input/output NCHW like PyTorch (f32 out)."""
    x = jnp.transpose(x_nchw, (0, 2, 3, 1)).astype(jnp.bfloat16)   # one transpose+cast

    # Block 1: conv(stride=2) + batch stats; raw bf16 output.
    y1, s1, t1, (m1, _, n, h1, w1, c1) = _conv_block(
        x, params["w1"], params["g1"], params["beta1"], stride=2)

    # Block-1 BN+ReLU is folded into block-2's im2col glue: one elementwise
    # pass over y1 that XLA fuses with the patch pad/gather (no standalone
    # Pallas pass, no extra HBM round trip).  Padding must come AFTER ReLU,
    # which is why this cannot live inside block 2's conv kernel.
    a1 = jnp.maximum(y1[:m1].astype(jnp.float32) * s1 + t1, 0.0)
    a1 = a1.astype(jnp.bfloat16).reshape(n, h1, w1, c1)

    # Block 2: conv(stride=1) + batch stats.
    y2, s2, t2, (m2, tm2, _, h2, w2, c2) = _conv_block(
        a1, params["w2"], params["g2"], params["beta2"], stride=1)

    # Final folded BN+ReLU epilogue (Pallas, megacore-parallel M tiles), f32.
    out = _bn_relu_pallas(y2, s2, t2, tm2)
    out = out[:m2].reshape(n, h2, w2, c2)
    return jnp.transpose(out, (0, 3, 1, 2))                        # NHWC -> NCHW


# ----------------------------------------------------------------------------
# Pure-JAX references for correctness checks
# ----------------------------------------------------------------------------
def _ref_block(x_nchw, w, b, g, beta, stride, matmul_dtype):
    y = lax.conv_general_dilated(
        x_nchw.astype(matmul_dtype), w.astype(matmul_dtype),
        window_strides=(stride, stride), padding=((1, 1), (1, 1)),
        dimension_numbers=("NCHW", "OIHW", "NCHW"),
        preferred_element_type=jnp.float32)
    y = y + b.reshape(1, -1, 1, 1)          # bias kept here (module semantics)
    mean = jnp.mean(y, axis=(0, 2, 3), keepdims=True)
    var = jnp.mean((y - mean) ** 2, axis=(0, 2, 3), keepdims=True)
    y = (y - mean) * lax.rsqrt(var + BN_EPS)
    y = y * g.reshape(1, -1, 1, 1) + beta.reshape(1, -1, 1, 1)
    return jnp.maximum(y, 0.0)


def down_forward_ref(x_nchw, p, matmul_dtype=jnp.float32):
    y = _ref_block(x_nchw, p["w1"], p["b1"], p["g1"], p["beta1"], 2, matmul_dtype)
    y = _ref_block(y, p["w2"], p["b2"], p["g2"], p["beta2"], 1, matmul_dtype)
    return y


# ----------------------------------------------------------------------------
# Deterministic parameter init (shapes follow the nn.Module __init__)
# ----------------------------------------------------------------------------
def init_params(key, in_channels, out_channels):
    k = jax.random.split(key, 4)
    fan1 = in_channels * 9
    fan2 = out_channels * 9
    return {
        "w1": jax.random.uniform(k[0], (out_channels, in_channels, 3, 3),
                                 jnp.float32, -1.0, 1.0) / np.sqrt(fan1),
        "b1": jax.random.uniform(k[1], (out_channels,), jnp.float32,
                                 -1.0, 1.0) / np.sqrt(fan1),
        "g1": jnp.ones((out_channels,), jnp.float32),
        "beta1": jnp.zeros((out_channels,), jnp.float32),
        "w2": jax.random.uniform(k[2], (out_channels, out_channels, 3, 3),
                                 jnp.float32, -1.0, 1.0) / np.sqrt(fan2),
        "b2": jax.random.uniform(k[3], (out_channels,), jnp.float32,
                                 -1.0, 1.0) / np.sqrt(fan2),
        "g2": jnp.ones((out_channels,), jnp.float32),
        "beta2": jnp.zeros((out_channels,), jnp.float32),
    }


if __name__ == "__main__":
    key = jax.random.PRNGKey(0)
    k_x, k_p = jax.random.split(key)

    N, Cin, H, W = 2, 4, 16, 16
    Cout = 8

    x = jax.random.normal(k_x, (N, Cin, H, W), jnp.float32)
    params = init_params(k_p, Cin, Cout)

    out = jax.block_until_ready(down_forward(x, params))
    assert out.shape == (N, Cout, H // 2, W // 2), out.shape

    # Tight-ish check vs a reference with matching matmul numerics (bf16 MXU
    # inputs, f32 accumulation); the kernel additionally stores the raw
    # intermediate in bf16, hence the a-few-ULP-of-bf16 tolerance.
    ref_bf16 = jax.block_until_ready(down_forward_ref(x, params, jnp.bfloat16))
    np.testing.assert_allclose(np.asarray(out), np.asarray(ref_bf16),
                               rtol=5e-2, atol=5e-2)

    # Loose check vs the full-f32 module semantics — bounds the deliberate
    # bf16-path approximation (including BN stats on bf16-input conv output).
    ref_f32 = jax.block_until_ready(down_forward_ref(x, params, jnp.float32))
    np.testing.assert_allclose(np.asarray(out), np.asarray(ref_f32),
                               rtol=1e-1, atol=1e-1)

    print("KERNEL_OK")
</pallas_src>

<mosaic_0001>
module attributes {stable_mosaic.version = 11 : i64} {
  func.func @_conv_stats_kernel(%arg0: i32, %arg1: i32, %arg2: memref<128x36xbf16, #tpu.memory_space<vmem>>, %arg3: memref<36x8xbf16, #tpu.memory_space<vmem>>, %arg4: memref<128x8xbf16, #tpu.memory_space<vmem>>, %arg5: memref<8x8xf32, #tpu.memory_space<vmem>>, %arg6: memref<8x8xf32, #tpu.memory_space<vmem>>) attributes {dimension_semantics = [#tpu.dimension_semantics<parallel>, #tpu.dimension_semantics<arbitrary>], iteration_bounds = array<i64: 1, 1>, scalar_prefetch = 0 : i64, scratch_operands = 0 : i64, tpu.core_type = #tpu.core_type<tc>, window_params = [{transform_indices = @transform_0, window_bounds = array<i64: 128, 36>}, {pipeline_mode = #tpu.pipeline_mode<synchronous>, transform_indices = @transform_1, window_bounds = array<i64: 36, 8>}, {transform_indices = @transform_2, window_bounds = array<i64: 128, 8>}, {transform_indices = @transform_3, window_bounds = array<i64: 8, 8>}, {transform_indices = @transform_4, window_bounds = array<i64: 8, 8>}]} {
    %c0_i32 = arith.constant 0 : i32
    %0 = arith.cmpi eq, %arg1, %c0_i32 : i32
    %1 = arith.extui %0 : i1 to i32
    %c0_i32_0 = arith.constant 0 : i32
    %2 = arith.cmpi ne, %1, %c0_i32_0 : i32
    scf.if %2 {
      %cst_16 = arith.constant 0.000000e+00 : f32
      %21 = vector.broadcast %cst_16 : f32 to vector<8x8xf32>
      %c0_17 = arith.constant 0 : index
      %c0_18 = arith.constant 0 : index
      %22 = vector.load %arg5[%c0_17, %c0_18] : memref<8x8xf32, #tpu.memory_space<vmem>>, vector<8x8xf32>
      tpu.vector_store %arg5[%c0_17, %c0_18], %21 {strides = array<i32>} : memref<8x8xf32, #tpu.memory_space<vmem>>, vector<8x8xf32>,
      %cst_19 = arith.constant 0.000000e+00 : f32
      %23 = vector.broadcast %cst_19 : f32 to vector<8x8xf32>
      %c0_20 = arith.constant 0 : index
      %c0_21 = arith.constant 0 : index
      %24 = vector.load %arg6[%c0_20, %c0_21] : memref<8x8xf32, #tpu.memory_space<vmem>>, vector<8x8xf32>
      tpu.vector_store %arg6[%c0_20, %c0_21], %23 {strides = array<i32>} : memref<8x8xf32, #tpu.memory_space<vmem>>, vector<8x8xf32>,
    } else {
    }
    %c0 = arith.constant 0 : index
    %c0_1 = arith.constant 0 : index
    %3 = vector.load %arg2[%c0, %c0_1] : memref<128x36xbf16, #tpu.memory_space<vmem>>, vector<128x36xbf16>
    %c0_2 = arith.constant 0 : index
    %c0_3 = arith.constant 0 : index
    %4 = vector.load %arg3[%c0_2, %c0_3] : memref<36x8xbf16, #tpu.memory_space<vmem>>, vector<36x8xbf16>
    %cst = arith.constant dense<0.000000e+00> : vector<128x8xf32>
    %5 = tpu.matmul %3, %4, %cst {dimension_numbers = #tpu.dot_dimension_numbers<[1], [0], [0], [1], [0, 0, 1, 1], [], []>} : vector<128x36xbf16>, vector<36x8xbf16>, vector<128x8xf32> -> vector<128x8xf32>
    %c0_4 = arith.constant 0 : index
    %c0_5 = arith.constant 0 : index
    %6 = vector.load %arg5[%c0_4, %c0_5] : memref<8x8xf32, #tpu.memory_space<vmem>>, vector<8x8xf32>
    %cst_6 = arith.constant dense<0.000000e+00> : vector<8xf32>
    %7 = vector.multi_reduction <add>, %5, %cst_6 [0] : vector<128x8xf32> to vector<8xf32>
    %8 = vector.shape_cast %7 : vector<8xf32> to vector<1x8xf32>
    %9 = vector.broadcast %8 : vector<1x8xf32> to vector<8x8xf32>
    %10 = arith.addf %6, %9 : vector<8x8xf32>
    %c0_7 = arith.constant 0 : index
    %c0_8 = arith.constant 0 : index
    %11 = vector.load %arg5[%c0_7, %c0_8] : memref<8x8xf32, #tpu.memory_space<vmem>>, vector<8x8xf32>
    tpu.vector_store %arg5[%c0_7, %c0_8], %10 {strides = array<i32>} : memref<8x8xf32, #tpu.memory_space<vmem>>, vector<8x8xf32>,
    %c0_9 = arith.constant 0 : index
    %c0_10 = arith.constant 0 : index
    %12 = vector.load %arg6[%c0_9, %c0_10] : memref<8x8xf32, #tpu.memory_space<vmem>>, vector<8x8xf32>
    %13 = arith.mulf %5, %5 : vector<128x8xf32>
    %cst_11 = arith.constant dense<0.000000e+00> : vector<8xf32>
    %14 = vector.multi_reduction <add>, %13, %cst_11 [0] : vector<128x8xf32> to vector<8xf32>
    %15 = vector.shape_cast %14 : vector<8xf32> to vector<1x8xf32>
    %16 = vector.broadcast %15 : vector<1x8xf32> to vector<8x8xf32>
    %17 = arith.addf %12, %16 : vector<8x8xf32>
    %c0_12 = arith.constant 0 : index
    %c0_13 = arith.constant 0 : index
    %18 = vector.load %arg6[%c0_12, %c0_13] : memref<8x8xf32, #tpu.memory_space<vmem>>, vector<8x8xf32>
    tpu.vector_store %arg6[%c0_12, %c0_13], %17 {strides = array<i32>} : memref<8x8xf32, #tpu.memory_space<vmem>>, vector<8x8xf32>,
    %19 = arith.truncf %5 : vector<128x8xf32> to vector<128x8xbf16>
    %c0_14 = arith.constant 0 : index
    %c0_15 = arith.constant 0 : index
    %20 = vector.load %arg4[%c0_14, %c0_15] : memref<128x8xbf16, #tpu.memory_space<vmem>>, vector<128x8xbf16>
    tpu.vector_store %arg4[%c0_14, %c0_15], %19 {strides = array<i32>} : memref<128x8xbf16, #tpu.memory_space<vmem>>, vector<128x8xbf16>,
    return
  }
  func.func @transform_0(%arg0: i32, %arg1: i32) -> (i32, i32) {
    %c1_i32 = arith.constant 1 : i32
    %0 = arith.muli %arg0, %c1_i32 : i32
    %1 = arith.addi %0, %arg1 : i32
    %c0_i32 = arith.constant 0 : i32
    %c0_i32_0 = arith.constant 0 : i32
    return %1, %c0_i32 : i32, i32
  }
  func.func @transform_1(%arg0: i32, %arg1: i32) -> (i32, i32) {
    %c0_i32 = arith.constant 0 : i32
    %c0_i32_0 = arith.constant 0 : i32
    %c0_i32_1 = arith.constant 0 : i32
    return %c0_i32, %c0_i32_0 : i32, i32
  }
  func.func @transform_2(%arg0: i32, %arg1: i32) -> (i32, i32) {
    %c1_i32 = arith.constant 1 : i32
    %0 = arith.muli %arg0, %c1_i32 : i32
    %1 = arith.addi %0, %arg1 : i32
    %c0_i32 = arith.constant 0 : i32
    %c0_i32_0 = arith.constant 0 : i32
    return %1, %c0_i32 : i32, i32
  }
  func.func @transform_3(%arg0: i32, %arg1: i32) -> (i32, i32) {
    %c0_i32 = arith.constant 0 : i32
    %c0_i32_0 = arith.constant 0 : i32
    return %arg0, %c0_i32 : i32, i32
  }
  func.func @transform_4(%arg0: i32, %arg1: i32) -> (i32, i32) {
    %c0_i32 = arith.constant 0 : i32
    %c0_i32_0 = arith.constant 0 : i32
    return %arg0, %c0_i32 : i32, i32
  }
}

module attributes {stable_mosaic.version = 11 : i64} {
  func.func @_conv_stats_kernel(%arg0: i32, %arg1: i32, %arg2: memref<128x72xbf16, #tpu.memory_space<vmem>>, %arg3: memref<72x8xbf16, #tpu.memory_space<vmem>>, %arg4: memref<128x8xbf16, #tpu.memory_space<vmem>>, %arg5: memref<8x8xf32, #tpu.memory_space<vmem>>, %arg6: memref<8x8xf32, #tpu.memory_space<vmem>>) attributes {dimension_semantics = [#tpu.dimension_semantics<parallel>, #tpu.dimension_semantics<arbitrary>], iteration_bounds = array<i64: 1, 1>, scalar_prefetch = 0 : i64, scratch_operands = 0 : i64, tpu.core_type = #tpu.core_type<tc>, window_params = [{transform_indices = @transform_0, window_bounds = array<i64: 128, 72>}, {pipeline_mode = #tpu.pipeline_mode<synchronous>, transform_indices = @transform_1, window_bounds = array<i64: 72, 8>}, {transform_indices = @transform_2, window_bounds = array<i64: 128, 8>}, {transform_indices = @transform_3, window_bounds = array<i64: 8, 8>}, {transform_indices = @transform_4, window_bounds = array<i64: 8, 8>}]} {
    %c0_i32 = arith.constant 0 : i32
    %0 = arith.cmpi eq, %arg1, %c0_i32 : i32
    %1 = arith.extui %0 : i1 to i32
    %c0_i32_0 = arith.constant 0 : i32
    %2 = arith.cmpi ne, %1, %c0_i32_0 : i32
    scf.if %2 {
      %cst_16 = arith.constant 0.000000e+00 : f32
      %21 = vector.broadcast %cst_16 : f32 to vector<8x8xf32>
      %c0_17 = arith.constant 0 : index
      %c0_18 = arith.constant 0 : index
      %22 = vector.load %arg5[%c0_17, %c0_18] : memref<8x8xf32, #tpu.memory_space<vmem>>, vector<8x8xf32>
      tpu.vector_store %arg5[%c0_17, %c0_18], %21 {strides = array<i32>} : memref<8x8xf32, #tpu.memory_space<vmem>>, vector<8x8xf32>,
      %cst_19 = arith.constant 0.000000e+00 : f32
      %23 = vector.broadcast %cst_19 : f32 to vector<8x8xf32>
      %c0_20 = arith.constant 0 : index
      %c0_21 = arith.constant 0 : index
      %24 = vector.load %arg6[%c0_20, %c0_21] : memref<8x8xf32, #tpu.memory_space<vmem>>, vector<8x8xf32>
      tpu.vector_store %arg6[%c0_20, %c0_21], %23 {strides = array<i32>} : memref<8x8xf32, #tpu.memory_space<vmem>>, vector<8x8xf32>,
    } else {
    }
    %c0 = arith.constant 0 : index
    %c0_1 = arith.constant 0 : index
    %3 = vector.load %arg2[%c0, %c0_1] : memref<128x72xbf16, #tpu.memory_space<vmem>>, vector<128x72xbf16>
    %c0_2 = arith.constant 0 : index
    %c0_3 = arith.constant 0 : index
    %4 = vector.load %arg3[%c0_2, %c0_3] : memref<72x8xbf16, #tpu.memory_space<vmem>>, vector<72x8xbf16>
    %cst = arith.constant dense<0.000000e+00> : vector<128x8xf32>
    %5 = tpu.matmul %3, %4, %cst {dimension_numbers = #tpu.dot_dimension_numbers<[1], [0], [0], [1], [0, 0, 1, 1], [], []>} : vector<128x72xbf16>, vector<72x8xbf16>, vector<128x8xf32> -> vector<128x8xf32>
    %c0_4 = arith.constant 0 : index
    %c0_5 = arith.constant 0 : index
    %6 = vector.load %arg5[%c0_4, %c0_5] : memref<8x8xf32, #tpu.memory_space<vmem>>, vector<8x8xf32>
    %cst_6 = arith.constant dense<0.000000e+00> : vector<8xf32>
    %7 = vector.multi_reduction <add>, %5, %cst_6 [0] : vector<128x8xf32> to vector<8xf32>
    %8 = vector.shape_cast %7 : vector<8xf32> to vector<1x8xf32>
    %9 = vector.broadcast %8 : vector<1x8xf32> to vector<8x8xf32>
    %10 = arith.addf %6, %9 : vector<8x8xf32>
    %c0_7 = arith.constant 0 : index
    %c0_8 = arith.constant 0 : index
    %11 = vector.load %arg5[%c0_7, %c0_8] : memref<8x8xf32, #tpu.memory_space<vmem>>, vector<8x8xf32>
    tpu.vector_store %arg5[%c0_7, %c0_8], %10 {strides = array<i32>} : memref<8x8xf32, #tpu.memory_space<vmem>>, vector<8x8xf32>,
    %c0_9 = arith.constant 0 : index
    %c0_10 = arith.constant 0 : index
    %12 = vector.load %arg6[%c0_9, %c0_10] : memref<8x8xf32, #tpu.memory_space<vmem>>, vector<8x8xf32>
    %13 = arith.mulf %5, %5 : vector<128x8xf32>
    %cst_11 = arith.constant dense<0.000000e+00> : vector<8xf32>
    %14 = vector.multi_reduction <add>, %13, %cst_11 [0] : vector<128x8xf32> to vector<8xf32>
    %15 = vector.shape_cast %14 : vector<8xf32> to vector<1x8xf32>
    %16 = vector.broadcast %15 : vector<1x8xf32> to vector<8x8xf32>
    %17 = arith.addf %12, %16 : vector<8x8xf32>
    %c0_12 = arith.constant 0 : index
    %c0_13 = arith.constant 0 : index
    %18 = vector.load %arg6[%c0_12, %c0_13] : memref<8x8xf32, #tpu.memory_space<vmem>>, vector<8x8xf32>
    tpu.vector_store %arg6[%c0_12, %c0_13], %17 {strides = array<i32>} : memref<8x8xf32, #tpu.memory_space<vmem>>, vector<8x8xf32>,
    %19 = arith.truncf %5 : vector<128x8xf32> to vector<128x8xbf16>
    %c0_14 = arith.constant 0 : index
    %c0_15 = arith.constant 0 : index
    %20 = vector.load %arg4[%c0_14, %c0_15] : memref<128x8xbf16, #tpu.memory_space<vmem>>, vector<128x8xbf16>
    tpu.vector_store %arg4[%c0_14, %c0_15], %19 {strides = array<i32>} : memref<128x8xbf16, #tpu.memory_space<vmem>>, vector<128x8xbf16>,
    return
  }
  func.func @transform_0(%arg0: i32, %arg1: i32) -> (i32, i32) {
    %c1_i32 = arith.constant 1 : i32
    %0 = arith.muli %arg0, %c1_i32 : i32
    %1 = arith.addi %0, %arg1 : i32
    %c0_i32 = arith.constant 0 : i32
    %c0_i32_0 = arith.constant 0 : i32
    return %1, %c0_i32 : i32, i32
  }
  func.func @transform_1(%arg0: i32, %arg1: i32) -> (i32, i32) {
    %c0_i32 = arith.constant 0 : i32
    %c0_i32_0 = arith.constant 0 : i32
    %c0_i32_1 = arith.constant 0 : i32
    return %c0_i32, %c0_i32_0 : i32, i32
  }
  func.func @transform_2(%arg0: i32, %arg1: i32) -> (i32, i32) {
    %c1_i32 = arith.constant 1 : i32
    %0 = arith.muli %arg0, %c1_i32 : i32
    %1 = arith.addi %0, %arg1 : i32
    %c0_i32 = arith.constant 0 : i32
    %c0_i32_0 = arith.constant 0 : i32
    return %1, %c0_i32 : i32, i32
  }
  func.func @transform_3(%arg0: i32, %arg1: i32) -> (i32, i32) {
    %c0_i32 = arith.constant 0 : i32
    %c0_i32_0 = arith.constant 0 : i32
    return %arg0, %c0_i32 : i32, i32
  }
  func.func @transform_4(%arg0: i32, %arg1: i32) -> (i32, i32) {
    %c0_i32 = arith.constant 0 : i32
    %c0_i32_0 = arith.constant 0 : i32
    return %arg0, %c0_i32 : i32, i32
  }
}

module attributes {stable_mosaic.version = 11 : i64} {
  func.func @_bn_relu_kernel(%arg0: i32, %arg1: memref<128x8xbf16, #tpu.memory_space<vmem>>, %arg2: memref<1x8xf32, #tpu.memory_space<vmem>>, %arg3: memref<1x8xf32, #tpu.memory_space<vmem>>, %arg4: memref<128x8xf32, #tpu.memory_space<vmem>>) attributes {dimension_semantics = [#tpu.dimension_semantics<parallel>], iteration_bounds = array<i64: 1>, scalar_prefetch = 0 : i64, scratch_operands = 0 : i64, tpu.core_type = #tpu.core_type<tc>, window_params = [{transform_indices = @transform_0, window_bounds = array<i64: 128, 8>}, {pipeline_mode = #tpu.pipeline_mode<synchronous>, transform_indices = @transform_1, window_bounds = array<i64: 1, 8>}, {pipeline_mode = #tpu.pipeline_mode<synchronous>, transform_indices = @transform_2, window_bounds = array<i64: 1, 8>}, {transform_indices = @transform_3, window_bounds = array<i64: 128, 8>}]} {
    %c0 = arith.constant 0 : index
    %c0_0 = arith.constant 0 : index
    %0 = vector.load %arg1[%c0, %c0_0] : memref<128x8xbf16, #tpu.memory_space<vmem>>, vector<128x8xbf16>
    %1 = arith.extf %0 : vector<128x8xbf16> to vector<128x8xf32>
    %c0_1 = arith.constant 0 : index
    %c0_2 = arith.constant 0 : index
    %2 = vector.load %arg2[%c0_1, %c0_2] : memref<1x8xf32, #tpu.memory_space<vmem>>, vector<1x8xf32>
    %3 = vector.broadcast %2 : vector<1x8xf32> to vector<128x8xf32>
    %4 = arith.mulf %1, %3 : vector<128x8xf32>
    %c0_3 = arith.constant 0 : index
    %c0_4 = arith.constant 0 : index
    %5 = vector.load %arg3[%c0_3, %c0_4] : memref<1x8xf32, #tpu.memory_space<vmem>>, vector<1x8xf32>
    %6 = vector.broadcast %5 : vector<1x8xf32> to vector<128x8xf32>
    %7 = arith.addf %4, %6 : vector<128x8xf32>
    %cst = arith.constant 0.000000e+00 : f32
    %8 = vector.broadcast %cst : f32 to vector<128x8xf32>
    %9 = arith.maximumf %7, %8 : vector<128x8xf32>
    %c0_5 = arith.constant 0 : index
    %c0_6 = arith.constant 0 : index
    %10 = vector.load %arg4[%c0_5, %c0_6] : memref<128x8xf32, #tpu.memory_space<vmem>>, vector<128x8xf32>
    tpu.vector_store %arg4[%c0_5, %c0_6], %9 {strides = array<i32>} : memref<128x8xf32, #tpu.memory_space<vmem>>, vector<128x8xf32>,
    return
  }
  func.func @transform_0(%arg0: i32) -> (i32, i32) {
    %c0_i32 = arith.constant 0 : i32
    %c0_i32_0 = arith.constant 0 : i32
    return %arg0, %c0_i32 : i32, i32
  }
  func.func @transform_1(%arg0: i32) -> (i32, i32) {
    %c0_i32 = arith.constant 0 : i32
    %c0_i32_0 = arith.constant 0 : i32
    %c0_i32_1 = arith.constant 0 : i32
    return %c0_i32, %c0_i32_0 : i32, i32
  }
  func.func @transform_2(%arg0: i32) -> (i32, i32) {
    %c0_i32 = arith.constant 0 : i32
    %c0_i32_0 = arith.constant 0 : i32
    %c0_i32_1 = arith.constant 0 : i32
    return %c0_i32, %c0_i32_0 : i32, i32
  }
  func.func @transform_3(%arg0: i32) -> (i32, i32) {
    %c0_i32 = arith.constant 0 : i32
    %c0_i32_0 = arith.constant 0 : i32
    return %arg0, %c0_i32 : i32, i32
  }
}

</mosaic_0001>

<bundles_post_ra>
// kernel: down_forward.3
= control target key start
LH: loop header
LB: loop body
LE: loop exit
PB: predicated region body
PF: predicated region fallthrough
CT: control target
= control target key end

     0   :  { %vm159_vm0 = vcmask 1041408   ;;  %vm134_vm1 = vcmask 293888   ;;  %vm325_vm2 = vcmask 60416   ;;  %vm55_vm3 = vcmask 64512   ;;  %s670_s1 = inlined_call_operand.vmem [shape: bf16[36,8], index: 1, kind: input, shape index: {}]   ;;  %s671_s0 = inlined_call_operand.vmem [shape: bf16[128,36], index: 0, kind: input, shape index: {}]   ;;  %s672_s2 = inlined_call_operand.vmem [shape: bf16[128,8], index: 2, kind: output, shape index: {0}]   ;;  %s673_s3 = inlined_call_operand.vmem [shape: f32[8,8], index: 3, kind: output, shape index: {1}]   ;;  %s674_s4 = inlined_call_operand.vmem [shape: f32[8,8], index: 4, kind: output, shape index: {2}]  }
   0x1   :  { %v78_v0 = vld [vmem:[%s670_s1 + $0x10] sm:$0x3]  ;;  %v439_v4 = vld [vmem:[%s670_s1 + $0x8] sm:$0xff]  ;;  %v438_v5 = vld [vmem:[%s670_s1] sm:$0xff]  ;;  %v450_v42 = vmov 0.0  }
   0x2   :  { %v128_v1 = vunpack.c.l.b16 %v78_v0  ;;  %v430_v6 = vld [vmem:[%s671_s0] sm:$0xff]  ;;  %v432_v7 = vld [vmem:[%s671_s0 + $0x10] sm:$0xff]  ;;  %v431_v10 = vld [vmem:[%s671_s0 + $0x8] sm:$0xff]  ;;  %56 = vst.msk [vmem:[%s673_s3] sm:$0xff] %vm55_vm3, %v450_v42 }
   0x3   :  { %v434_v8 = vld [vmem:[%s671_s0 + $0x20] sm:$0xff]  ;;  %v436_v9 = vld [vmem:[%s671_s0 + $0x30] sm:$0xff]  ;;  %v433_v11 = vld [vmem:[%s671_s0 + $0x18] sm:$0xff]  ;;  %57 = vst.msk [vmem:[%s674_s4] sm:$0xff] %vm55_vm3, %v450_v42 }
   0x4   :  { %v131_v2 = vpack.c.b16 %v128_v1, %v128_v1  ;;  %v435_v12 = vld [vmem:[%s671_s0 + $0x28] sm:$0xff]  ;;  %v437_v13 = vld [vmem:[%s671_s0 + $0x38] sm:$0xff] }
   0x6   :  { %v161_v3 = vsel %vm159_vm0, %v131_v2, 0 }
   0x7   :  { %168 = vmatpush.bf16.msra.mxu0 %v161_v3  ;;  %440 = vmatpush.bf16.msra.mxu1 %v161_v3 }
   0x8   :  { %441 = vmatpush.bf16.msra.mxu2 %v161_v3  ;;  %442 = vmatpush.bf16.msra.mxu3 %v161_v3 }
   0xb   :  { %169 = vmatpush.bf16.msra.mxu0 %v439_v4  ;;  %443 = vmatpush.bf16.msra.mxu1 %v439_v4 }
   0xc   :  { %444 = vmatpush.bf16.msra.mxu2 %v439_v4  ;;  %445 = vmatpush.bf16.msra.mxu3 %v439_v4 }
   0xf   :  { %170 = vmatpush.bf16.msra.mxu0 %v438_v5  ;;  %446 = vmatpush.bf16.msra.mxu1 %v438_v5 }
  0x10   :  { %447 = vmatpush.bf16.msra.mxu2 %v438_v5  ;;  %448 = vmatpush.bf16.msra.mxu3 %v438_v5 }
  0x12   :  { %422 = vmatmul.msk.bf16.vlgmr.msra.gmra.mxu0 %vm134_vm1, %v430_v6  ;;  %424 = vmatmul.msk.bf16.vlgmr.msra.gmra.mxu1 %vm134_vm1, %v432_v7 }
  0x13   :  { %426 = vmatmul.msk.bf16.vlgmr.msra.gmra.mxu2 %vm134_vm1, %v434_v8  ;;  %428 = vmatmul.msk.bf16.vlgmr.msra.gmra.mxu3 %vm134_vm1, %v436_v9 }
  0x22   :  { %423 = vmatmul.msk.bf16.gmra.mxu0 %vm134_vm1, %v431_v10  ;;  %425 = vmatmul.msk.bf16.gmra.mxu1 %vm134_vm1, %v433_v11 }
  0x23   :  { %427 = vmatmul.msk.bf16.gmra.mxu2 %vm134_vm1, %v435_v12  ;;  %429 = vmatmul.msk.bf16.gmra.mxu3 %vm134_vm1, %v437_v13 }
  0x8f   :  { %v172_v14 = vpop.f32.mrf.mxu0  ;;  %v182_v15 = vpop.f32.mrf.mxu1 }
  0x90   :  { %v309_v16 = vpack.c.bf16 %v172_v14, %v172_v14  ;;  %v313_v17 = vpack.c.bf16 %v182_v15, %v182_v15  ;;  %v254_v33 = vmul.f32 %v172_v14, %v172_v14  ;;  %v214_v38 = vsel %vm55_vm3, %v172_v14, 0.0 }
  0x91   :  { %v258_v52 = vmul.f32 %v182_v15, %v182_v15  ;;  %v221_v59 = vsel %vm55_vm3, %v182_v15, 0.0 }
  0x92   :  { %326 = vst.msk [vmem:[%s672_s2] sm:$0xf] %vm325_vm2, %v309_v16  ;;  %v270_v43 = vsel %vm55_vm3, %v254_v33, 0.0 }
  0x93   :  { %330 = vst.msk [vmem:[%s672_s2 + $0x10] sm:$0xf] %vm325_vm2, %v313_v17  ;;  %v277_v1 = vsel %vm55_vm3, %v258_v52, 0.0 }
  0x96   :  { %v525_v18 = vpop.f32.mrf.mxu2  ;;  %v527_v19 = vpop.f32.mrf.mxu3 }
  0x97   :  { %v174_v20 = vpop.f32.mrf.mxu0  ;;  %v184_v21 = vpop.f32.mrf.mxu1  ;;  %v317_v22 = vpack.c.bf16 %v525_v18, %v525_v18  ;;  %v321_v25 = vpack.c.bf16 %v527_v19, %v527_v19  ;;  %v262_v11 = vmul.f32 %v525_v18, %v525_v18 }
  0x98   :  { %v310_v23 = vpack.c.bf16 %v174_v20, %v174_v20  ;;  %v314_v24 = vpack.c.bf16 %v184_v21, %v184_v21  ;;  %v255_v31 = vmul.f32 %v174_v20, %v174_v20  ;;  %v215_v35 = vsel %vm55_vm3, %v174_v20, 0.0 }
  0x99   :  { %334 = vst.msk [vmem:[%s672_s2 + $0x20] sm:$0xf] %vm325_vm2, %v317_v22  ;;  %v216_v41 = vadd.f32 %v215_v35, %v214_v38  ;;  %v259_v60 = vmul.f32 %v184_v21, %v184_v21  ;;  %v223_v2 = vsel %vm55_vm3, %v184_v21, 0.0  ;;  %v229_v22 = vsel %vm55_vm3, %v525_v18, 0.0 }
  0x9a   :  { %327 = vst.msk [vmem:[%s672_s2 + $0x4] sm:$0xf] %vm325_vm2, %v310_v23  ;;  %v271_v39 = vsel %vm55_vm3, %v255_v31, 0.0  ;;  %v266_v38 = vmul.f32 %v527_v19, %v527_v19 }
  0x9b   :  { %331 = vst.msk [vmem:[%s672_s2 + $0x14] sm:$0xf] %vm325_vm2, %v314_v24  ;;  %v272_v47 = vadd.f32 %v271_v39, %v270_v43  ;;  %v279_v6 = vsel %vm55_vm3, %v259_v60, 0.0 }
  0x9c   :  { %338 = vst.msk [vmem:[%s672_s2 + $0x30] sm:$0xf] %vm325_vm2, %v321_v25 }
  0x9e   :  { %v549_v26 = vpop.f32.mrf.mxu2  ;;  %v551_v27 = vpop.f32.mrf.mxu3 }
  0x9f   :  { %v177_v28 = vpop.f32.mrf.mxu0  ;;  %v187_v29 = vpop.f32.mrf.mxu1  ;;  %v318_v30 = vpack.c.bf16 %v549_v26, %v549_v26  ;;  %v322_v37 = vpack.c.bf16 %v551_v27, %v551_v27  ;;  %v263_v23 = vmul.f32 %v549_v26, %v549_v26  ;;  %v231_v18 = vsel %vm55_vm3, %v549_v26, 0.0 }
  0xa0   :  { %v311_v32 = vpack.c.bf16 %v177_v28, %v177_v28  ;;  %v315_v34 = vpack.c.bf16 %v187_v29, %v187_v29  ;;  %v256_v36 = vmul.f32 %v177_v28, %v177_v28  ;;  %v217_v40 = vsel %vm55_vm3, %v177_v28, 0.0 }
  0xa1   :  { %335 = vst.msk [vmem:[%s672_s2 + $0x24] sm:$0xf] %vm325_vm2, %v318_v30  ;;  %v218_v48 = vadd.f32 %v217_v40, %v216_v41  ;;  %v260_v3 = vmul.f32 %v187_v29, %v187_v29  ;;  %v225_v7 = vsel %vm55_vm3, %v187_v29, 0.0  ;;  %v285_v29 = vsel %vm55_vm3, %v262_v11, 0.0 }
  0xa2   :  { %328 = vst.msk [vmem:[%s672_s2 + $0x8] sm:$0xf] %vm325_vm2, %v311_v32  ;;  %v273_v44 = vsel %vm55_vm3, %v256_v36, 0.0  ;;  %v287_v33 = vsel %vm55_vm3, %v263_v23, 0.0  ;;  %v237_v26 = vsel %vm55_vm3, %v527_v19, 0.0  ;;  %v267_v43 = vmul.f32 %v551_v27, %v551_v27 }
  0xa3   :  { %332 = vst.msk [vmem:[%s672_s2 + $0x18] sm:$0xf] %vm325_vm2, %v315_v34  ;;  %v274_v56 = vadd.f32 %v273_v44, %v272_v47  ;;  %v281_v14 = vsel %vm55_vm3, %v260_v3, 0.0 }
  0xa4   :  { %339 = vst.msk [vmem:[%s672_s2 + $0x34] sm:$0xf] %vm325_vm2, %v322_v37 }
  0xa6   :  { %v197_v45 = vpop.f32.mrf.mxu2  ;;  %v583_v46 = vpop.f32.mrf.mxu3 }
  0xa7   :  { %v179_v49 = vpop.f32.mrf.mxu0  ;;  %v189_v50 = vpop.f32.mrf.mxu1  ;;  %v319_v51 = vpack.c.bf16 %v197_v45, %v197_v45  ;;  %v323_v62 = vpack.c.bf16 %v583_v46, %v583_v46  ;;  %v264_v30 = vmul.f32 %v197_v45, %v197_v45  ;;  %v233_v34 = vsel %vm55_vm3, %v197_v45, 0.0 }
  0xa8   :  { %v219_v53 = vsel %vm55_vm3, %v179_v49, 0.0  ;;  %v257_v54 = vmul.f32 %v179_v49, %v179_v49  ;;  %v312_v55 = vpack.c.bf16 %v179_v49, %v179_v49  ;;  %v316_v58 = vpack.c.bf16 %v189_v50, %v189_v50 }
  0xa9   :  { %v220_v57 = vadd.f32 %v219_v53, %v218_v48  ;;  %336 = vst.msk [vmem:[%s672_s2 + $0x28] sm:$0xf] %vm325_vm2, %v319_v51  ;;  %v261_v8 = vmul.f32 %v189_v50, %v189_v50  ;;  %v227_v15 = vsel %vm55_vm3, %v189_v50, 0.0  ;;  %v289_v39 = vsel %vm55_vm3, %v264_v30, 0.0 }
  0xaa   :  { %v275_v61 = vsel %vm55_vm3, %v257_v54, 0.0  ;;  %329 = vst.msk [vmem:[%s672_s2 + $0xc] sm:$0xf] %vm325_vm2, %v312_v55  ;;  %v293_v48 = vsel %vm55_vm3, %v266_v38, 0.0  ;;  %v239_v49 = vsel %vm55_vm3, %v551_v27, 0.0  ;;  %v268_v50 = vmul.f32 %v583_v46, %v583_v46 }
  0xab   :  { %v222_v63 = vadd.f32 %v221_v59, %v220_v57  ;;  %v276_v0 = vadd.f32 %v275_v61, %v274_v56  ;;  %333 = vst.msk [vmem:[%s672_s2 + $0x1c] sm:$0xf] %vm325_vm2, %v316_v58  ;;  %v283_v24 = vsel %vm55_vm3, %v261_v8, 0.0  ;;  %v295_v53 = vsel %vm55_vm3, %v267_v43, 0.0 }
  0xac   :  { %340 = vst.msk [vmem:[%s672_s2 + $0x38] sm:$0xf] %vm325_vm2, %v323_v62  ;;  %v241_v19 = vsel %vm55_vm3, %v583_v46, 0.0  ;;  %v297_v57 = vsel %vm55_vm3, %v268_v50, 0.0 }
  0xad   :  { %v278_v4 = vadd.f32 %v277_v1, %v276_v0  ;;  %v224_v5 = vadd.f32 %v223_v2, %v222_v63 }
  0xae   :  { %v199_v9 = vpop.f32.mrf.mxu2  ;;  %v209_v10 = vpop.f32.mrf.mxu3 }
  0xaf   :  { %v226_v12 = vadd.f32 %v225_v7, %v224_v5  ;;  %v280_v13 = vadd.f32 %v279_v6, %v278_v4  ;;  %v320_v16 = vpack.c.bf16 %v199_v9, %v199_v9  ;;  %v324_v17 = vpack.c.bf16 %v209_v10, %v209_v10  ;;  %v212_v6 = vld [vmem:[%s673_s3] sm:$0xff] }
  0xb0   :  { %v265_v35 = vmul.f32 %v199_v9, %v199_v9  ;;  %v235_v40 = vsel %vm55_vm3, %v199_v9, 0.0  ;;  %v269_v54 = vmul.f32 %v209_v10, %v209_v10  ;;  %v243_v58 = vsel %vm55_vm3, %v209_v10, 0.0  ;;  %v253_v9 = vld [vmem:[%s674_s4] sm:$0xff] }
  0xb1   :  { %v228_v20 = vadd.f32 %v227_v15, %v226_v12  ;;  %v282_v21 = vadd.f32 %v281_v14, %v280_v13  ;;  %337 = vst.msk [vmem:[%s672_s2 + $0x2c] sm:$0xf] %vm325_vm2, %v320_v16 }
  0xb2   :  { %341 = vst.msk [vmem:[%s672_s2 + $0x3c] sm:$0xf] %vm325_vm2, %v324_v17  ;;  %v291_v44 = vsel %vm55_vm3, %v265_v35, 0.0  ;;  %v299_v27 = vsel %vm55_vm3, %v269_v54, 0.0 }
  0xb3   :  { %v230_v25 = vadd.f32 %v229_v22, %v228_v20  ;;  %v284_v28 = vadd.f32 %v283_v24, %v282_v21 }
  0xb5   :  { %v286_v31 = vadd.f32 %v285_v29, %v284_v28  ;;  %v232_v32 = vadd.f32 %v231_v18, %v230_v25 }
  0xb7   :  { %v234_v36 = vadd.f32 %v233_v34, %v232_v32  ;;  %v288_v37 = vadd.f32 %v287_v33, %v286_v31 }
  0xb9   :  { %v290_v41 = vadd.f32 %v289_v39, %v288_v37  ;;  %v236_v42 = vadd.f32 %v235_v40, %v234_v36 }
  0xbb   :  { %v238_v45 = vadd.f32 %v237_v26, %v236_v42  ;;  %v292_v47 = vadd.f32 %v291_v44, %v290_v41 }
  0xbd   :  { %v294_v51 = vadd.f32 %v293_v48, %v292_v47  ;;  %v240_v52 = vadd.f32 %v239_v49, %v238_v45 }
  0xbf   :  { %v242_v55 = vadd.f32 %v241_v19, %v240_v52  ;;  %v296_v56 = vadd.f32 %v295_v53, %v294_v51 }
  0xc1   :  { %v298_v59 = vadd.f32 %v297_v57, %v296_v56  ;;  %v244_v60 = vadd.f32 %v243_v58, %v242_v55 }
  0xc3   :  { %v245_v61 = vrot.slane %v244_v60, 4  ;;  %v300_v62 = vadd.f32 %v299_v27, %v298_v59 }
  0xc5   :  { %v246_v63 = vadd.f32 %v245_v61, %v244_v60  ;;  %v301_v0 = vrot.slane %v300_v62, 4 }
  0xc7   :  { %v247_v1 = vrot.slane %v246_v63, 2  ;;  %v302_v2 = vadd.f32 %v301_v0, %v300_v62 }
  0xc9   :  { %v248_v3 = vadd.f32 %v247_v1, %v246_v63  ;;  %v303_v4 = vrot.slane %v302_v2, 2 }
  0xcb   :  { %v249_v46 = vrot.slane %v248_v3, 1  ;;  %v304_v5 = vadd.f32 %v303_v4, %v302_v2 }
  0xcd   :  { %v250_v7 = vadd.f32 %v249_v46, %v248_v3  ;;  %v305_v8 = vrot.slane %v304_v5, 1 }
  0xcf   :  { %v251_v10 = vadd.f32 %v250_v7, %v212_v6  ;;  %v306_v11 = vadd.f32 %v305_v8, %v304_v5 }
  0xd1   :  { %252 = vst.msk [vmem:[%s673_s3] sm:$0xff] %vm55_vm3, %v251_v10  ;;  %v307_v12 = vadd.f32 %v306_v11, %v253_v9 }
  0xd3   :  { %308 = vst.msk [vmem:[%s674_s4] sm:$0xff] %vm55_vm3, %v307_v12 }

// kernel: down_forward.4
= control target key start
LH: loop header
LB: loop body
LE: loop exit
PB: predicated region body
PF: predicated region fallthrough
CT: control target
= control target key end

     0   :  { %vm175_vm0 = vcmask 1043456   ;;  %vm150_vm1 = vcmask 588800   ;;  %vm341_vm2 = vcmask 60416   ;;  %vm55_vm3 = vcmask 64512   ;;  %s708_s1 = inlined_call_operand.vmem [shape: bf16[72,8], index: 1, kind: input, shape index: {}]   ;;  %s709_s0 = inlined_call_operand.vmem [shape: bf16[128,72], index: 0, kind: input, shape index: {}]   ;;  %s710_s2 = inlined_call_operand.vmem [shape: bf16[128,8], index: 2, kind: output, shape index: {0}]   ;;  %s711_s3 = inlined_call_operand.vmem [shape: f32[8,8], index: 3, kind: output, shape index: {1}]   ;;  %s712_s4 = inlined_call_operand.vmem [shape: f32[8,8], index: 4, kind: output, shape index: {2}]  }
   0x1   :  { %v82_v0 = vld [vmem:[%s708_s1 + $0x20] sm:$0xf]  ;;  %v465_v4 = vld [vmem:[%s708_s1 + $0x18] sm:$0xff]  ;;  %v464_v5 = vld [vmem:[%s708_s1 + $0x10] sm:$0xff]  ;;  %v482_v44 = vmov 0.0  }
   0x2   :  { %v140_v1 = vunpack.c.l.b16 %v82_v0  ;;  %v463_v6 = vld [vmem:[%s708_s1 + $0x8] sm:$0xff]  ;;  %v462_v7 = vld [vmem:[%s708_s1] sm:$0xff]  ;;  %v456_v9 = vld [vmem:[%s709_s0 + $0x10] sm:$0xff]  ;;  %56 = vst.msk [vmem:[%s711_s3] sm:$0xff] %vm55_vm3, %v482_v44 }
   0x3   :  { %v454_v8 = vld [vmem:[%s709_s0] sm:$0xff]  ;;  %v460_v11 = vld [vmem:[%s709_s0 + $0x30] sm:$0xff]  ;;  %v455_v12 = vld [vmem:[%s709_s0 + $0x8] sm:$0xff]  ;;  %57 = vst.msk [vmem:[%s712_s4] sm:$0xff] %vm55_vm3, %v482_v44 }
   0x4   :  { %v145_v2 = vpack.c.b16 %v140_v1, %v140_v1  ;;  %v458_v10 = vld [vmem:[%s709_s0 + $0x20] sm:$0xff]  ;;  %v457_v13 = vld [vmem:[%s709_s0 + $0x18] sm:$0xff]  ;;  %v459_v14 = vld [vmem:[%s709_s0 + $0x28] sm:$0xff] }
   0x5   :  { %v461_v15 = vld [vmem:[%s709_s0 + $0x38] sm:$0xff] }
   0x6   :  { %v177_v3 = vsel %vm175_vm0, %v145_v2, 0 }
   0x7   :  { %182 = vmatpush.bf16.msra.mxu0 %v177_v3  ;;  %466 = vmatpush.bf16.msra.mxu1 %v177_v3 }
   0x8   :  { %467 = vmatpush.bf16.msra.mxu2 %v177_v3  ;;  %468 = vmatpush.bf16.msra.mxu3 %v177_v3 }
   0xb   :  { %183 = vmatpush.bf16.msra.mxu0 %v465_v4  ;;  %469 = vmatpush.bf16.msra.mxu1 %v465_v4 }
   0xc   :  { %470 = vmatpush.bf16.msra.mxu2 %v465_v4  ;;  %471 = vmatpush.bf16.msra.mxu3 %v465_v4 }
   0xf   :  { %184 = vmatpush.bf16.msra.mxu0 %v464_v5  ;;  %472 = vmatpush.bf16.msra.mxu1 %v464_v5 }
  0x10   :  { %473 = vmatpush.bf16.msra.mxu2 %v464_v5  ;;  %474 = vmatpush.bf16.msra.mxu3 %v464_v5 }
  0x13   :  { %185 = vmatpush.bf16.msra.mxu0 %v463_v6  ;;  %475 = vmatpush.bf16.msra.mxu1 %v463_v6 }
  0x14   :  { %476 = vmatpush.bf16.msra.mxu2 %v463_v6  ;;  %477 = vmatpush.bf16.msra.mxu3 %v463_v6 }
  0x17   :  { %186 = vmatpush.bf16.msra.mxu0 %v462_v7  ;;  %478 = vmatpush.bf16.msra.mxu1 %v462_v7 }
  0x18   :  { %479 = vmatpush.bf16.msra.mxu2 %v462_v7  ;;  %480 = vmatpush.bf16.msra.mxu3 %v462_v7 }
  0x1a   :  { %446 = vmatmul.msk.bf16.vlgmr.msra.gmra.mxu0 %vm150_vm1, %v454_v8  ;;  %448 = vmatmul.msk.bf16.vlgmr.msra.gmra.mxu1 %vm150_vm1, %v456_v9 }
  0x1b   :  { %450 = vmatmul.msk.bf16.vlgmr.msra.gmra.mxu2 %vm150_vm1, %v458_v10  ;;  %452 = vmatmul.msk.bf16.vlgmr.msra.gmra.mxu3 %vm150_vm1, %v460_v11 }
  0x2a   :  { %447 = vmatmul.msk.bf16.gmra.mxu0 %vm150_vm1, %v455_v12  ;;  %449 = vmatmul.msk.bf16.gmra.mxu1 %vm150_vm1, %v457_v13 }
  0x2b   :  { %451 = vmatmul.msk.bf16.gmra.mxu2 %vm150_vm1, %v459_v14  ;;  %453 = vmatmul.msk.bf16.gmra.mxu3 %vm150_vm1, %v461_v15 }
  0x97   :  { %v188_v16 = vpop.f32.mrf.mxu0  ;;  %v198_v17 = vpop.f32.mrf.mxu1 }
  0x98   :  { %v325_v18 = vpack.c.bf16 %v188_v16, %v188_v16  ;;  %v329_v19 = vpack.c.bf16 %v198_v17, %v198_v17  ;;  %v270_v35 = vmul.f32 %v188_v16, %v188_v16  ;;  %v230_v40 = vsel %vm55_vm3, %v188_v16, 0.0 }
  0x99   :  { %v274_v54 = vmul.f32 %v198_v17, %v198_v17  ;;  %v237_v61 = vsel %vm55_vm3, %v198_v17, 0.0 }
  0x9a   :  { %342 = vst.msk [vmem:[%s710_s2] sm:$0xf] %vm341_vm2, %v325_v18  ;;  %v286_v45 = vsel %vm55_vm3, %v270_v35, 0.0 }
  0x9b   :  { %346 = vst.msk [vmem:[%s710_s2 + $0x10] sm:$0xf] %vm341_vm2, %v329_v19  ;;  %v293_v3 = vsel %vm55_vm3, %v274_v54, 0.0 }
  0x9e   :  { %v563_v20 = vpop.f32.mrf.mxu2  ;;  %v565_v21 = vpop.f32.mrf.mxu3 }
  0x9f   :  { %v190_v22 = vpop.f32.mrf.mxu0  ;;  %v200_v23 = vpop.f32.mrf.mxu1  ;;  %v333_v24 = vpack.c.bf16 %v563_v20, %v563_v20  ;;  %v337_v27 = vpack.c.bf16 %v565_v21, %v565_v21  ;;  %v278_v13 = vmul.f32 %v563_v20, %v563_v20 }
  0xa0   :  { %v326_v25 = vpack.c.bf16 %v190_v22, %v190_v22  ;;  %v330_v26 = vpack.c.bf16 %v200_v23, %v200_v23  ;;  %v271_v33 = vmul.f32 %v190_v22, %v190_v22  ;;  %v231_v37 = vsel %vm55_vm3, %v190_v22, 0.0 }
  0xa1   :  { %350 = vst.msk [vmem:[%s710_s2 + $0x20] sm:$0xf] %vm341_vm2, %v333_v24  ;;  %v232_v43 = vadd.f32 %v231_v37, %v230_v40  ;;  %v275_v62 = vmul.f32 %v200_v23, %v200_v23  ;;  %v239_v4 = vsel %vm55_vm3, %v200_v23, 0.0  ;;  %v245_v24 = vsel %vm55_vm3, %v563_v20, 0.0 }
  0xa2   :  { %343 = vst.msk [vmem:[%s710_s2 + $0x4] sm:$0xf] %vm341_vm2, %v326_v25  ;;  %v287_v41 = vsel %vm55_vm3, %v271_v33, 0.0  ;;  %v282_v40 = vmul.f32 %v565_v21, %v565_v21 }
  0xa3   :  { %347 = vst.msk [vmem:[%s710_s2 + $0x14] sm:$0xf] %vm341_vm2, %v330_v26  ;;  %v288_v49 = vadd.f32 %v287_v41, %v286_v45  ;;  %v295_v8 = vsel %vm55_vm3, %v275_v62, 0.0 }
  0xa4   :  { %354 = vst.msk [vmem:[%s710_s2 + $0x30] sm:$0xf] %vm341_vm2, %v337_v27 }
  0xa6   :  { %v587_v28 = vpop.f32.mrf.mxu2  ;;  %v589_v29 = vpop.f32.mrf.mxu3 }
  0xa7   :  { %v193_v30 = vpop.f32.mrf.mxu0  ;;  %v203_v31 = vpop.f32.mrf.mxu1  ;;  %v334_v32 = vpack.c.bf16 %v587_v28, %v587_v28  ;;  %v338_v39 = vpack.c.bf16 %v589_v29, %v589_v29  ;;  %v279_v25 = vmul.f32 %v587_v28, %v587_v28  ;;  %v247_v20 = vsel %vm55_vm3, %v587_v28, 0.0 }
  0xa8   :  { %v327_v34 = vpack.c.bf16 %v193_v30, %v193_v30  ;;  %v331_v36 = vpack.c.bf16 %v203_v31, %v203_v31  ;;  %v272_v38 = vmul.f32 %v193_v30, %v193_v30  ;;  %v233_v42 = vsel %vm55_vm3, %v193_v30, 0.0 }
  0xa9   :  { %351 = vst.msk [vmem:[%s710_s2 + $0x24] sm:$0xf] %vm341_vm2, %v334_v32  ;;  %v234_v50 = vadd.f32 %v233_v42, %v232_v43  ;;  %v276_v5 = vmul.f32 %v203_v31, %v203_v31  ;;  %v241_v9 = vsel %vm55_vm3, %v203_v31, 0.0  ;;  %v301_v31 = vsel %vm55_vm3, %v278_v13, 0.0 }
  0xaa   :  { %344 = vst.msk [vmem:[%s710_s2 + $0x8] sm:$0xf] %vm341_vm2, %v327_v34  ;;  %v289_v46 = vsel %vm55_vm3, %v272_v38, 0.0  ;;  %v303_v35 = vsel %vm55_vm3, %v279_v25, 0.0  ;;  %v253_v28 = vsel %vm55_vm3, %v565_v21, 0.0  ;;  %v283_v45 = vmul.f32 %v589_v29, %v589_v29 }
  0xab   :  { %348 = vst.msk [vmem:[%s710_s2 + $0x18] sm:$0xf] %vm341_vm2, %v331_v36  ;;  %v290_v58 = vadd.f32 %v289_v46, %v288_v49  ;;  %v297_v16 = vsel %vm55_vm3, %v276_v5, 0.0 }
  0xac   :  { %355 = vst.msk [vmem:[%s710_s2 + $0x34] sm:$0xf] %vm341_vm2, %v338_v39 }
  0xae   :  { %v213_v47 = vpop.f32.mrf.mxu2  ;;  %v621_v48 = vpop.f32.mrf.mxu3 }
  0xaf   :  { %v195_v51 = vpop.f32.mrf.mxu0  ;;  %v205_v52 = vpop.f32.mrf.mxu1  ;;  %v335_v53 = vpack.c.bf16 %v213_v47, %v213_v47  ;;  %v339_v0 = vpack.c.bf16 %v621_v48, %v621_v48  ;;  %v280_v32 = vmul.f32 %v213_v47, %v213_v47  ;;  %v249_v36 = vsel %vm55_vm3, %v213_v47, 0.0 }
  0xb0   :  { %v235_v55 = vsel %vm55_vm3, %v195_v51, 0.0  ;;  %v273_v56 = vmul.f32 %v195_v51, %v195_v51  ;;  %v328_v57 = vpack.c.bf16 %v195_v51, %v195_v51  ;;  %v332_v60 = vpack.c.bf16 %v205_v52, %v205_v52 }
  0xb1   :  { %v236_v59 = vadd.f32 %v235_v55, %v234_v50  ;;  %352 = vst.msk [vmem:[%s710_s2 + $0x28] sm:$0xf] %vm341_vm2, %v335_v53  ;;  %v277_v10 = vmul.f32 %v205_v52, %v205_v52  ;;  %v243_v17 = vsel %vm55_vm3, %v205_v52, 0.0  ;;  %v305_v41 = vsel %vm55_vm3, %v280_v32, 0.0 }
  0xb2   :  { %v291_v63 = vsel %vm55_vm3, %v273_v56, 0.0  ;;  %345 = vst.msk [vmem:[%s710_s2 + $0xc] sm:$0xf] %vm341_vm2, %v328_v57  ;;  %v309_v50 = vsel %vm55_vm3, %v282_v40, 0.0  ;;  %v255_v51 = vsel %vm55_vm3, %v589_v29, 0.0  ;;  %v284_v52 = vmul.f32 %v621_v48, %v621_v48 }
  0xb3   :  { %v238_v1 = vadd.f32 %v237_v61, %v236_v59  ;;  %v292_v2 = vadd.f32 %v291_v63, %v290_v58  ;;  %349 = vst.msk [vmem:[%s710_s2 + $0x1c] sm:$0xf] %vm341_vm2, %v332_v60  ;;  %v299_v26 = vsel %vm55_vm3, %v277_v10, 0.0  ;;  %v311_v55 = vsel %vm55_vm3, %v283_v45, 0.0 }
  0xb4   :  { %356 = vst.msk [vmem:[%s710_s2 + $0x38] sm:$0xf] %vm341_vm2, %v339_v0  ;;  %v257_v21 = vsel %vm55_vm3, %v621_v48, 0.0  ;;  %v313_v59 = vsel %vm55_vm3, %v284_v52, 0.0 }
  0xb5   :  { %v294_v6 = vadd.f32 %v293_v3, %v292_v2  ;;  %v240_v7 = vadd.f32 %v239_v4, %v238_v1 }
  0xb6   :  { %v215_v11 = vpop.f32.mrf.mxu2  ;;  %v225_v12 = vpop.f32.mrf.mxu3 }
  0xb7   :  { %v242_v14 = vadd.f32 %v241_v9, %v240_v7  ;;  %v296_v15 = vadd.f32 %v295_v8, %v294_v6  ;;  %v336_v18 = vpack.c.bf16 %v215_v11, %v215_v11  ;;  %v340_v19 = vpack.c.bf16 %v225_v12, %v225_v12  ;;  %v228_v8 = vld [vmem:[%s711_s3] sm:$0xff] }
  0xb8   :  { %v281_v37 = vmul.f32 %v215_v11, %v215_v11  ;;  %v251_v42 = vsel %vm55_vm3, %v215_v11, 0.0  ;;  %v285_v56 = vmul.f32 %v225_v12, %v225_v12  ;;  %v259_v60 = vsel %vm55_vm3, %v225_v12, 0.0  ;;  %v269_v11 = vld [vmem:[%s712_s4] sm:$0xff] }
  0xb9   :  { %v244_v22 = vadd.f32 %v243_v17, %v242_v14  ;;  %v298_v23 = vadd.f32 %v297_v16, %v296_v15  ;;  %353 = vst.msk [vmem:[%s710_s2 + $0x2c] sm:$0xf] %vm341_vm2, %v336_v18 }
  0xba   :  { %357 = vst.msk [vmem:[%s710_s2 + $0x3c] sm:$0xf] %vm341_vm2, %v340_v19  ;;  %v307_v46 = vsel %vm55_vm3, %v281_v37, 0.0  ;;  %v315_v29 = vsel %vm55_vm3, %v285_v56, 0.0 }
  0xbb   :  { %v246_v27 = vadd.f32 %v245_v24, %v244_v22  ;;  %v300_v30 = vadd.f32 %v299_v26, %v298_v23 }
  0xbd   :  { %v302_v33 = vadd.f32 %v301_v31, %v300_v30  ;;  %v248_v34 = vadd.f32 %v247_v20, %v246_v27 }
  0xbf   :  { %v250_v38 = vadd.f32 %v249_v36, %v248_v34  ;;  %v304_v39 = vadd.f32 %v303_v35, %v302_v33 }
  0xc1   :  { %v306_v43 = vadd.f32 %v305_v41, %v304_v39  ;;  %v252_v44 = vadd.f32 %v251_v42, %v250_v38 }
  0xc3   :  { %v254_v47 = vadd.f32 %v253_v28, %v252_v44  ;;  %v308_v49 = vadd.f32 %v307_v46, %v306_v43 }
  0xc5   :  { %v310_v53 = vadd.f32 %v309_v50, %v308_v49  ;;  %v256_v54 = vadd.f32 %v255_v51, %v254_v47 }
  0xc7   :  { %v258_v57 = vadd.f32 %v257_v21, %v256_v54  ;;  %v312_v58 = vadd.f32 %v311_v55, %v310_v53 }
  0xc9   :  { %v314_v61 = vadd.f32 %v313_v59, %v312_v58  ;;  %v260_v62 = vadd.f32 %v259_v60, %v258_v57 }
  0xcb   :  { %v261_v63 = vrot.slane %v260_v62, 4  ;;  %v316_v0 = vadd.f32 %v315_v29, %v314_v61 }
  0xcd   :  { %v262_v1 = vadd.f32 %v261_v63, %v260_v62  ;;  %v317_v2 = vrot.slane %v316_v0, 4 }
  0xcf   :  { %v263_v3 = vrot.slane %v262_v1, 2  ;;  %v318_v4 = vadd.f32 %v317_v2, %v316_v0 }
  0xd1   :  { %v264_v5 = vadd.f32 %v263_v3, %v262_v1  ;;  %v319_v6 = vrot.slane %v318_v4, 2 }
  0xd3   :  { %v265_v48 = vrot.slane %v264_v5, 1  ;;  %v320_v7 = vadd.f32 %v319_v6, %v318_v4 }
  0xd5   :  { %v266_v9 = vadd.f32 %v265_v48, %v264_v5  ;;  %v321_v10 = vrot.slane %v320_v7, 1 }
  0xd7   :  { %v267_v12 = vadd.f32 %v266_v9, %v228_v8  ;;  %v322_v13 = vadd.f32 %v321_v10, %v320_v7 }
  0xd9   :  { %268 = vst.msk [vmem:[%s711_s3] sm:$0xff] %vm55_vm3, %v267_v12  ;;  %v323_v14 = vadd.f32 %v322_v13, %v269_v11 }
  0xdb   :  { %324 = vst.msk [vmem:[%s712_s4] sm:$0xff] %vm55_vm3, %v323_v14 }

// kernel: down_forward.5
= control target key start
LH: loop header
LB: loop body
LE: loop exit
PB: predicated region body
PF: predicated region fallthrough
CT: control target
= control target key end

     0   :  { %vm102_vm0 = vcmask 64512   ;;  %s314_s0 = inlined_call_operand.vmem [shape: bf16[128,8], index: 0, kind: input, shape index: {}]   ;;  %s315_s1 = inlined_call_operand.vmem [shape: f32[1,8], index: 1, kind: input, shape index: {}]   ;;  %s316_s2 = inlined_call_operand.vmem [shape: f32[1,8], index: 2, kind: input, shape index: {}]   ;;  %s317_s3 = inlined_call_operand.vmem [shape: f32[128,8], index: 3, kind: output, shape index: {}]  }
   0x1   :  { %v124_v0 = vld [vmem:[%s314_s0] sm:$0xff]   ;;  %v155_v5 = vld [vmem:[%s314_s0 + $0x8] sm:$0xff]   ;;  %v156_v8 = vld [vmem:[%s314_s0 + $0x10] sm:$0xff]  }
   0x2   :  { %v190_v1 = vld [vmem:[%s315_s1] ss:$0 sm:$0xff]  ;;  %v125_v2 = vunpack.c.l.bf16 %v124_v0  ;;  %v126_v4 = vunpack.c.h.bf16 %v124_v0  ;;  %v129_v6 = vunpack.c.l.bf16 %v155_v5  ;;  %v130_v7 = vunpack.c.h.bf16 %v155_v5  ;;  %v157_v9 = vld [vmem:[%s314_s0 + $0x18] sm:$0xff]   ;;  %v159_v31 = vld [vmem:[%s314_s0 + $0x28] sm:$0xff]  }
   0x3   :  { %v195_v3 = vld [vmem:[%s316_s2] ss:$0 sm:$0xff]  ;;  %v133_v12 = vunpack.c.l.bf16 %v156_v8  ;;  %v134_v13 = vunpack.c.h.bf16 %v156_v8  ;;  %v137_v16 = vunpack.c.l.bf16 %v157_v9  ;;  %v138_v17 = vunpack.c.h.bf16 %v157_v9  ;;  %v160_v36 = vld [vmem:[%s314_s0 + $0x30] sm:$0xff]   ;;  %v161_v41 = vld [vmem:[%s314_s0 + $0x38] sm:$0xff]  }
   0x4   :  { %v50_v10 = vmul.f32 %v190_v1, %v125_v2  ;;  %v51_v11 = vmul.f32 %v190_v1, %v126_v4  ;;  %v52_v14 = vmul.f32 %v190_v1, %v129_v6  ;;  %v53_v15 = vmul.f32 %v190_v1, %v130_v7  ;;  %v158_v26 = vld [vmem:[%s314_s0 + $0x20] sm:$0xff]  }
   0x5   :  { %v54_v20 = vmul.f32 %v190_v1, %v133_v12  ;;  %v55_v21 = vmul.f32 %v190_v1, %v134_v13  ;;  %v56_v24 = vmul.f32 %v190_v1, %v137_v16  ;;  %v57_v25 = vmul.f32 %v190_v1, %v138_v17 }
   0x6   :  { %v70_v18 = vadd.f32 %v195_v3, %v50_v10  ;;  %v71_v19 = vadd.f32 %v195_v3, %v51_v11  ;;  %v72_v22 = vadd.f32 %v195_v3, %v52_v14  ;;  %v73_v23 = vadd.f32 %v195_v3, %v53_v15 }
   0x7   :  { %v74_v29 = vadd.f32 %v195_v3, %v54_v20  ;;  %v75_v30 = vadd.f32 %v195_v3, %v55_v21  ;;  %v76_v34 = vadd.f32 %v195_v3, %v56_v24  ;;  %v77_v35 = vadd.f32 %v195_v3, %v57_v25 }
   0x8   :  { %v86_v27 = vmax.f32 %v70_v18, 0.0  ;;  %v87_v28 = vmax.f32 %v71_v19, 0.0  ;;  %v88_v32 = vmax.f32 %v72_v22, 0.0  ;;  %v89_v33 = vmax.f32 %v73_v23, 0.0 }
   0x9   :  { %v90_v37 = vmax.f32 %v74_v29, 0.0  ;;  %v91_v38 = vmax.f32 %v75_v30, 0.0  ;;  %v141_v39 = vunpack.c.l.bf16 %v158_v26  ;;  %v142_v40 = vunpack.c.h.bf16 %v158_v26 }
   0xa   :  { %103 = vst.msk [vmem:[%s317_s3] sm:$0xff] %vm102_vm0, %v86_v27  ;;  %v92_v42 = vmax.f32 %v76_v34, 0.0  ;;  %v93_v43 = vmax.f32 %v77_v35, 0.0  ;;  %v145_v44 = vunpack.c.l.bf16 %v159_v31  ;;  %v146_v45 = vunpack.c.h.bf16 %v159_v31 }
   0xb   :  { %104 = vst.msk [vmem:[%s317_s3 + $0x8] sm:$0xff] %vm102_vm0, %v87_v28  ;;  %v58_v46 = vmul.f32 %v190_v1, %v141_v39  ;;  %v59_v47 = vmul.f32 %v190_v1, %v142_v40  ;;  %v149_v48 = vunpack.c.l.bf16 %v160_v36  ;;  %v150_v49 = vunpack.c.h.bf16 %v160_v36 }
   0xc   :  { %105 = vst.msk [vmem:[%s317_s3 + $0x10] sm:$0xff] %vm102_vm0, %v88_v32  ;;  %v60_v50 = vmul.f32 %v190_v1, %v145_v44  ;;  %v61_v51 = vmul.f32 %v190_v1, %v146_v45  ;;  %v153_v52 = vunpack.c.l.bf16 %v161_v41  ;;  %v154_v53 = vunpack.c.h.bf16 %v161_v41 }
   0xd   :  { %106 = vst.msk [vmem:[%s317_s3 + $0x18] sm:$0xff] %vm102_vm0, %v89_v33  ;;  %v78_v54 = vadd.f32 %v195_v3, %v58_v46  ;;  %v79_v55 = vadd.f32 %v195_v3, %v59_v47  ;;  %v62_v56 = vmul.f32 %v190_v1, %v149_v48  ;;  %v63_v57 = vmul.f32 %v190_v1, %v150_v49 }
   0xe   :  { %107 = vst.msk [vmem:[%s317_s3 + $0x20] sm:$0xff] %vm102_vm0, %v90_v37  ;;  %v80_v58 = vadd.f32 %v195_v3, %v60_v50  ;;  %v81_v59 = vadd.f32 %v195_v3, %v61_v51  ;;  %v64_v60 = vmul.f32 %v190_v1, %v153_v52  ;;  %v65_v61 = vmul.f32 %v190_v1, %v154_v53 }
   0xf   :  { %108 = vst.msk [vmem:[%s317_s3 + $0x28] sm:$0xff] %vm102_vm0, %v91_v38  ;;  %v94_v62 = vmax.f32 %v78_v54, 0.0  ;;  %v95_v63 = vmax.f32 %v79_v55, 0.0  ;;  %v82_v0 = vadd.f32 %v195_v3, %v62_v56  ;;  %v83_v2 = vadd.f32 %v195_v3, %v63_v57 }
  0x10   :  { %109 = vst.msk [vmem:[%s317_s3 + $0x30] sm:$0xff] %vm102_vm0, %v92_v42  ;;  %v96_v4 = vmax.f32 %v80_v58, 0.0  ;;  %v97_v5 = vmax.f32 %v81_v59, 0.0  ;;  %v84_v1 = vadd.f32 %v195_v3, %v64_v60  ;;  %v85_v6 = vadd.f32 %v195_v3, %v65_v61 }
  0x11   :  { %110 = vst.msk [vmem:[%s317_s3 + $0x38] sm:$0xff] %vm102_vm0, %v93_v43  ;;  %v98_v7 = vmax.f32 %v82_v0, 0.0  ;;  %v99_v8 = vmax.f32 %v83_v2, 0.0 }
  0x12   :  { %111 = vst.msk [vmem:[%s317_s3 + $0x40] sm:$0xff] %vm102_vm0, %v94_v62  ;;  %v100_v9 = vmax.f32 %v84_v1, 0.0  ;;  %v101_v3 = vmax.f32 %v85_v6, 0.0 }
  0x13   :  { %112 = vst.msk [vmem:[%s317_s3 + $0x48] sm:$0xff] %vm102_vm0, %v95_v63 }
  0x14   :  { %113 = vst.msk [vmem:[%s317_s3 + $0x50] sm:$0xff] %vm102_vm0, %v96_v4 }
  0x15   :  { %114 = vst.msk [vmem:[%s317_s3 + $0x58] sm:$0xff] %vm102_vm0, %v97_v5 }
  0x16   :  { %115 = vst.msk [vmem:[%s317_s3 + $0x60] sm:$0xff] %vm102_vm0, %v98_v7 }
  0x17   :  { %116 = vst.msk [vmem:[%s317_s3 + $0x68] sm:$0xff] %vm102_vm0, %v99_v8 }
  0x18   :  { %117 = vst.msk [vmem:[%s317_s3 + $0x70] sm:$0xff] %vm102_vm0, %v100_v9 }
  0x19   :  { %118 = vst.msk [vmem:[%s317_s3 + $0x78] sm:$0xff] %vm102_vm0, %v101_v3 }

</bundles_post_ra>
